<compile_context>
chip_gen: v7x
topology: tpu7x:2x2x1
jax: 0.10.0
libtpu: 0.0.40
codegen_flags: <defaults>
</compile_context>

<pallas_src>
import jax
import jax.numpy as jnp
import numpy as np
from jax.experimental import pallas as pl
from jax.experimental.pallas import tpu as pltpu

_LANE = 128
_VMEM_LIMIT = 48 * 1024 * 1024  # safe on v5e/v6e (128 MiB) and v7x (64 MiB)


def _round_up(x, m):
    return ((x + m - 1) // m) * m


def _pad2d(a, rows, cols):
    r, c = a.shape
    if r == rows and c == cols:
        return a
    return jnp.pad(a, ((0, rows - r), (0, cols - c)))


def _pick_tile(n_padded):
    for t in (512, 256, 128):
        if n_padded % t == 0:
            return t
    return 128


# --------------------------------------------------------------------------
# Stage 1: encoder  Z = adj @ (relu(adj @ (X @ W0)) @ W1)
# --------------------------------------------------------------------------
def _encode_kernel(x_ref, adj_ref, w0_ref, w1_ref, z_ref):
    x = x_ref[...]
    adj = adj_ref[...]
    w0 = w0_ref[...]
    w1 = w1_ref[...]

    # base_gcn: relu(adj @ (X @ W0))
    h = jnp.dot(x, w0, preferred_element_type=jnp.float32)
    h = jnp.dot(adj, h, preferred_element_type=jnp.float32)
    h = jnp.maximum(h, 0.0)

    # gcn_mean (identity activation): adj @ (h @ W1)
    z = jnp.dot(h, w1, preferred_element_type=jnp.float32)
    z = jnp.dot(adj, z, preferred_element_type=jnp.float32)
    z_ref[...] = z


# --------------------------------------------------------------------------
# Stage 2: decoder  A_pred = sigmoid(Z @ Z.T), tiled over the NxN output
# --------------------------------------------------------------------------
def _decode_kernel(zr_ref, zc_ref, out_ref):
    # Contract the last dim of both operands directly on the MXU; no explicit
    # transpose of the VMEM tile is materialized.
    logits = jax.lax.dot_general(
        zr_ref[...], zc_ref[...],
        dimension_numbers=(((1,), (1,)), ((), ())),
        preferred_element_type=jnp.float32,
    )
    out_ref[...] = jax.nn.sigmoid(logits)


@jax.jit
def gae_forward(x, adj, w0, w1):
    n, in_dim = x.shape
    h1 = w0.shape[1]
    h2 = w1.shape[1]

    # Pad everything to lane-dense (multiples of 128) shapes.
    n_p = _round_up(n, _LANE)
    in_p = _round_up(in_dim, _LANE)
    h1_p = _round_up(h1, _LANE)
    h2_p = _round_up(h2, _LANE)

    x_p = _pad2d(x, n_p, in_p)
    adj_p = _pad2d(adj, n_p, n_p)
    w0_p = _pad2d(w0, in_p, h1_p)
    w1_p = _pad2d(w1, h1_p, h2_p)

    vmem_spec = pl.BlockSpec(memory_space=pltpu.MemorySpace.VMEM)

    # TODO(synk): for very large graphs, tile the two adjacency contractions in
    # the encoder over row/K blocks instead of whole-array VMEM residency.
    z = pl.pallas_call(
        _encode_kernel,
        out_shape=jax.ShapeDtypeStruct((n_p, h2_p), jnp.float32),
        in_specs=[vmem_spec, vmem_spec, vmem_spec, vmem_spec],
        out_specs=vmem_spec,
        compiler_params=pltpu.CompilerParams(
            vmem_limit_bytes=_VMEM_LIMIT,
        ),
    )(x_p, adj_p, w0_p, w1_p)

    tm = tn = _pick_tile(n_p)
    a_pred = pl.pallas_call(
        _decode_kernel,
        out_shape=jax.ShapeDtypeStruct((n_p, n_p), jnp.float32),
        grid=(n_p // tm, n_p // tn),
        in_specs=[
            pl.BlockSpec((tm, h2_p), lambda i, j: (i, 0)),
            pl.BlockSpec((tn, h2_p), lambda i, j: (j, 0)),
        ],
        out_specs=pl.BlockSpec((tm, tn), lambda i, j: (i, j)),
        compiler_params=pltpu.CompilerParams(
            dimension_semantics=("parallel", "parallel"),
            vmem_limit_bytes=_VMEM_LIMIT,
        ),
    )(z, z)

    return a_pred[:n, :n]


# --------------------------------------------------------------------------
# Reference / test harness
# --------------------------------------------------------------------------
def glorot_init(key, input_dim, output_dim):
    # matches torch glorot_init: uniform(-r, r), r = sqrt(6/(in+out))
    init_range = np.sqrt(6.0 / (input_dim + output_dim))
    return jax.random.uniform(
        key, (input_dim, output_dim), dtype=jnp.float32,
        minval=-init_range, maxval=init_range,
    )


def gae_reference(x, adj, w0, w1):
    h = jnp.maximum(adj @ (x @ w0), 0.0)
    z = adj @ (h @ w1)
    return jax.nn.sigmoid(z @ z.T)


if __name__ == "__main__":
    # small, deterministic problem: N=64 nodes, input_dim=32, h1=32, h2=16
    N, INPUT_DIM, HIDDEN1, HIDDEN2 = 64, 32, 32, 16

    key = jax.random.PRNGKey(0)
    k_x, k_adj, k_w0, k_w1 = jax.random.split(key, 4)

    x = jax.random.normal(k_x, (N, INPUT_DIM), dtype=jnp.float32)

    # symmetric dense adjacency with self loops, row-normalized
    a = (jax.random.uniform(k_adj, (N, N)) < 0.1).astype(jnp.float32)
    a = jnp.maximum(a, a.T) + jnp.eye(N, dtype=jnp.float32)
    deg = jnp.sum(a, axis=1, keepdims=True)
    adj = a / deg

    w0 = glorot_init(k_w0, INPUT_DIM, HIDDEN1)
    w1 = glorot_init(k_w1, HIDDEN1, HIDDEN2)

    a_pred = gae_forward(x, adj, w0, w1)
    jax.block_until_ready(a_pred)

    a_ref = gae_reference(x, adj, w0, w1)
    np.testing.assert_allclose(np.asarray(a_pred), np.asarray(a_ref),
                               rtol=1e-5, atol=1e-5)

    print("KERNEL_OK")
</pallas_src>

<mosaic_0001>
module attributes {stable_mosaic.version = 11 : i64} {
  func.func @_encode_kernel(%arg0: memref<128x128xf32, #tpu.memory_space<vmem>>, %arg1: memref<128x128xf32, #tpu.memory_space<vmem>>, %arg2: memref<128x128xf32, #tpu.memory_space<vmem>>, %arg3: memref<128x128xf32, #tpu.memory_space<vmem>>, %arg4: memref<128x128xf32, #tpu.memory_space<vmem>>) attributes {dimension_semantics = [], scalar_prefetch = 0 : i64, scratch_operands = 0 : i64, tpu.core_type = #tpu.core_type<tc>} {
    %c0 = arith.constant 0 : index
    %c0_0 = arith.constant 0 : index
    %0 = vector.load %arg0[%c0, %c0_0] : memref<128x128xf32, #tpu.memory_space<vmem>>, vector<128x128xf32>
    %c0_1 = arith.constant 0 : index
    %c0_2 = arith.constant 0 : index
    %1 = vector.load %arg1[%c0_1, %c0_2] : memref<128x128xf32, #tpu.memory_space<vmem>>, vector<128x128xf32>
    %c0_3 = arith.constant 0 : index
    %c0_4 = arith.constant 0 : index
    %2 = vector.load %arg2[%c0_3, %c0_4] : memref<128x128xf32, #tpu.memory_space<vmem>>, vector<128x128xf32>
    %c0_5 = arith.constant 0 : index
    %c0_6 = arith.constant 0 : index
    %3 = vector.load %arg3[%c0_5, %c0_6] : memref<128x128xf32, #tpu.memory_space<vmem>>, vector<128x128xf32>
    %cst = arith.constant dense<0.000000e+00> : vector<128x128xf32>
    %4 = tpu.matmul %0, %2, %cst {dimension_numbers = #tpu.dot_dimension_numbers<[1], [0], [0], [1], [0, 0, 1, 1], [], []>} : vector<128x128xf32>, vector<128x128xf32>, vector<128x128xf32> -> vector<128x128xf32>
    %cst_7 = arith.constant dense<0.000000e+00> : vector<128x128xf32>
    %5 = tpu.matmul %1, %4, %cst_7 {dimension_numbers = #tpu.dot_dimension_numbers<[1], [0], [0], [1], [0, 0, 1, 1], [], []>} : vector<128x128xf32>, vector<128x128xf32>, vector<128x128xf32> -> vector<128x128xf32>
    %cst_8 = arith.constant 0.000000e+00 : f32
    %6 = vector.broadcast %cst_8 : f32 to vector<128x128xf32>
    %7 = arith.maximumf %5, %6 : vector<128x128xf32>
    %cst_9 = arith.constant dense<0.000000e+00> : vector<128x128xf32>
    %8 = tpu.matmul %7, %3, %cst_9 {dimension_numbers = #tpu.dot_dimension_numbers<[1], [0], [0], [1], [0, 0, 1, 1], [], []>} : vector<128x128xf32>, vector<128x128xf32>, vector<128x128xf32> -> vector<128x128xf32>
    %cst_10 = arith.constant dense<0.000000e+00> : vector<128x128xf32>
    %9 = tpu.matmul %1, %8, %cst_10 {dimension_numbers = #tpu.dot_dimension_numbers<[1], [0], [0], [1], [0, 0, 1, 1], [], []>} : vector<128x128xf32>, vector<128x128xf32>, vector<128x128xf32> -> vector<128x128xf32>
    %c0_11 = arith.constant 0 : index
    %c0_12 = arith.constant 0 : index
    %10 = vector.load %arg4[%c0_11, %c0_12] : memref<128x128xf32, #tpu.memory_space<vmem>>, vector<128x128xf32>
    tpu.vector_store %arg4[%c0_11, %c0_12], %9 {strides = array<i32>} : memref<128x128xf32, #tpu.memory_space<vmem>>, vector<128x128xf32>,
    return
  }
}

module attributes {stable_mosaic.version = 11 : i64} {
  func.func @_decode_kernel(%arg0: i32, %arg1: i32, %arg2: memref<128x128xf32, #tpu.memory_space<vmem>>, %arg3: memref<128x128xf32, #tpu.memory_space<vmem>>, %arg4: memref<128x128xf32, #tpu.memory_space<vmem>>) attributes {dimension_semantics = [#tpu.dimension_semantics<parallel>, #tpu.dimension_semantics<parallel>], iteration_bounds = array<i64: 1, 1>, scalar_prefetch = 0 : i64, scratch_operands = 0 : i64, tpu.core_type = #tpu.core_type<tc>, window_params = [{transform_indices = @transform_0, window_bounds = array<i64: 128, 128>}, {transform_indices = @transform_1, window_bounds = array<i64: 128, 128>}, {transform_indices = @transform_2, window_bounds = array<i64: 128, 128>}]} {
    %c0 = arith.constant 0 : index
    %c0_0 = arith.constant 0 : index
    %0 = vector.load %arg2[%c0, %c0_0] : memref<128x128xf32, #tpu.memory_space<vmem>>, vector<128x128xf32>
    %c0_1 = arith.constant 0 : index
    %c0_2 = arith.constant 0 : index
    %1 = vector.load %arg3[%c0_1, %c0_2] : memref<128x128xf32, #tpu.memory_space<vmem>>, vector<128x128xf32>
    %cst = arith.constant dense<0.000000e+00> : vector<128x128xf32>
    %2 = tpu.matmul %0, %1, %cst {dimension_numbers = #tpu.dot_dimension_numbers<[1], [1], [0], [0], [0, 0, 1, 0], [], []>} : vector<128x128xf32>, vector<128x128xf32>, vector<128x128xf32> -> vector<128x128xf32>
    %3 = arith.negf %2 : vector<128x128xf32>
    %4 = math.exp %3 : vector<128x128xf32>
    %cst_3 = arith.constant 1.000000e+00 : f32
    %5 = vector.broadcast %cst_3 : f32 to vector<128x128xf32>
    %6 = arith.addf %5, %4 : vector<128x128xf32>
    %7 = arith.divf %5, %6 : vector<128x128xf32>
    %c0_4 = arith.constant 0 : index
    %c0_5 = arith.constant 0 : index
    %8 = vector.load %arg4[%c0_4, %c0_5] : memref<128x128xf32, #tpu.memory_space<vmem>>, vector<128x128xf32>
    tpu.vector_store %arg4[%c0_4, %c0_5], %7 {strides = array<i32>} : memref<128x128xf32, #tpu.memory_space<vmem>>, vector<128x128xf32>,
    return
  }
  func.func @transform_0(%arg0: i32, %arg1: i32) -> (i32, i32) {
    %c0_i32 = arith.constant 0 : i32
    %c0_i32_0 = arith.constant 0 : i32
    return %arg0, %c0_i32 : i32, i32
  }
  func.func @transform_1(%arg0: i32, %arg1: i32) -> (i32, i32) {
    %c0_i32 = arith.constant 0 : i32
    %c0_i32_0 = arith.constant 0 : i32
    return %arg1, %c0_i32 : i32, i32
  }
  func.func @transform_2(%arg0: i32, %arg1: i32) -> (i32, i32) {
    %c0_i32 = arith.constant 0 : i32
    return %arg0, %arg1 : i32, i32
  }
}

</mosaic_0001>

<bundles_post_ra>
// kernel: gae_forward.3
= control target key start
LH: loop header
LB: loop body
LE: loop exit
PB: predicated region body
PF: predicated region fallthrough
CT: control target
= control target key end

     0   :  { %s679_s1 = inlined_call_operand.vmem [shape: f32[128,128], index: 1, kind: input, shape index: {}, may-alias: {0,1}]   ;;  %s680_s0 = inlined_call_operand.vmem [shape: f32[128,128], index: 0, kind: input, shape index: {}, may-alias: {0,1}]   ;;  %s681_s2 = inlined_call_operand.vmem [shape: f32[128,128], index: 2, kind: output, shape index: {}]  }
   0x1   :  { %v27_v0 = vld [vmem:[%s679_s1] sm:$0xff]  ;;  %v28_v1 = vld [vmem:[%s679_s1 + $0x8] sm:$0xff]  ;;  %v29_v2 = vld [vmem:[%s679_s1 + $0x10] sm:$0xff] }
   0x2   :  { %v408_v3 = vpack.c.bf16 %v28_v1, %v27_v0  ;;  %v30_v4 = vld [vmem:[%s679_s1 + $0x18] sm:$0xff]  ;;  %v11_v6 = vld [vmem:[%s680_s0] sm:$0xff]  ;;  %v32_v9 = vld [vmem:[%s679_s1 + $0x28] sm:$0xff] }
   0x3   :  { %v412_v5 = vpack.c.bf16 %v30_v4, %v29_v2  ;;  %v19_v7 = vld [vmem:[%s680_s0 + $0x40] sm:$0xff]  ;;  %384 = vmatprep.mubr.f32.mxu0 %v11_v6  ;;  %v33_v11 = vld [vmem:[%s679_s1 + $0x30] sm:$0xff]  ;;  %v34_v12 = vld [vmem:[%s679_s1 + $0x38] sm:$0xff] }
   0x4   :  { %409 = vmatprep.subr.bf16.mxu0 %v408_v3  ;;  %440 = vmatprep.subr.bf16.mxu1 %v408_v3  ;;  %v31_v8 = vld [vmem:[%s679_s1 + $0x20] sm:$0xff]  ;;  %v420_v13 = vpack.c.bf16 %v34_v12, %v33_v11  ;;  %v36_v15 = vld [vmem:[%s679_s1 + $0x48] sm:$0xff]  ;;  %v37_v17 = vld [vmem:[%s679_s1 + $0x50] sm:$0xff] }
   0x5   :  { %411 = vmatpush3.bf16.xpose.msra.mxu0 %v408_v3  ;;  %448 = vmatpush3.bf16.xpose.msra.mxu1 %v408_v3  ;;  %v416_v10 = vpack.c.bf16 %v32_v9, %v31_v8  ;;  %v35_v14 = vld [vmem:[%s679_s1 + $0x40] sm:$0xff]  ;;  %v38_v18 = vld [vmem:[%s679_s1 + $0x58] sm:$0xff]  ;;  %v40_v21 = vld [vmem:[%s679_s1 + $0x68] sm:$0xff] }
   0x6   :  { %413 = vmatprep.subr.bf16.mxu0 %v412_v5  ;;  %441 = vmatprep.subr.bf16.mxu1 %v412_v5  ;;  %v424_v16 = vpack.c.bf16 %v36_v15, %v35_v14  ;;  %v428_v19 = vpack.c.bf16 %v38_v18, %v37_v17  ;;  %v39_v20 = vld [vmem:[%s679_s1 + $0x60] sm:$0xff]  ;;  %v41_v23 = vld [vmem:[%s679_s1 + $0x70] sm:$0xff]  ;;  %v42_v24 = vld [vmem:[%s679_s1 + $0x78] sm:$0xff] }
   0x7   :  { %396 = vmatprep.mubr.f32.mxu1 %v19_v7  ;;  %v432_v22 = vpack.c.bf16 %v40_v21, %v39_v20  ;;  %v436_v25 = vpack.c.bf16 %v42_v24, %v41_v23  ;;  %v12_v26 = vld [vmem:[%s680_s0 + $0x8] sm:$0xff]  ;;  %v13_v28 = vld [vmem:[%s680_s0 + $0x10] sm:$0xff]  ;;  %v14_v30 = vld [vmem:[%s680_s0 + $0x18] sm:$0xff] }
   0x8   :  { %v20_v27 = vld [vmem:[%s680_s0 + $0x48] sm:$0xff]  ;;  %v21_v29 = vld [vmem:[%s680_s0 + $0x50] sm:$0xff]  ;;  %v22_v31 = vld [vmem:[%s680_s0 + $0x58] sm:$0xff] }
   0x9   :  { %v15_v32 = vld [vmem:[%s680_s0 + $0x20] sm:$0xff]  ;;  %v16_v34 = vld [vmem:[%s680_s0 + $0x28] sm:$0xff]  ;;  %v17_v36 = vld [vmem:[%s680_s0 + $0x30] sm:$0xff] }
   0xa   :  { %v23_v33 = vld [vmem:[%s680_s0 + $0x60] sm:$0xff]  ;;  %v24_v35 = vld [vmem:[%s680_s0 + $0x68] sm:$0xff]  ;;  %v25_v37 = vld [vmem:[%s680_s0 + $0x70] sm:$0xff] }
   0xb   :  { %v18_v38 = vld [vmem:[%s680_s0 + $0x38] sm:$0xff] }
   0xc   :  { %v26_v39 = vld [vmem:[%s680_s0 + $0x78] sm:$0xff] }
   0xd   :  { %415 = vmatpush3.bf16.xpose.msra.mxu0 %v412_v5  ;;  %449 = vmatpush3.bf16.xpose.msra.mxu1 %v412_v5 }
   0xe   :  { %417 = vmatprep.subr.bf16.mxu0 %v416_v10  ;;  %442 = vmatprep.subr.bf16.mxu1 %v416_v10 }
  0x15   :  { %419 = vmatpush3.bf16.xpose.msra.mxu0 %v416_v10  ;;  %450 = vmatpush3.bf16.xpose.msra.mxu1 %v416_v10 }
  0x16   :  { %421 = vmatprep.subr.bf16.mxu0 %v420_v13  ;;  %443 = vmatprep.subr.bf16.mxu1 %v420_v13 }
  0x1d   :  { %423 = vmatpush3.bf16.xpose.msra.mxu0 %v420_v13  ;;  %451 = vmatpush3.bf16.xpose.msra.mxu1 %v420_v13 }
  0x1e   :  { %425 = vmatprep.subr.bf16.mxu0 %v424_v16  ;;  %444 = vmatprep.subr.bf16.mxu1 %v424_v16 }
  0x25   :  { %427 = vmatpush3.bf16.xpose.msra.mxu0 %v424_v16  ;;  %452 = vmatpush3.bf16.xpose.msra.mxu1 %v424_v16 }
  0x26   :  { %429 = vmatprep.subr.bf16.mxu0 %v428_v19  ;;  %445 = vmatprep.subr.bf16.mxu1 %v428_v19 }
  0x2d   :  { %431 = vmatpush3.bf16.xpose.msra.mxu0 %v428_v19  ;;  %453 = vmatpush3.bf16.xpose.msra.mxu1 %v428_v19 }
  0x2e   :  { %433 = vmatprep.subr.bf16.mxu0 %v432_v22  ;;  %446 = vmatprep.subr.bf16.mxu1 %v432_v22 }
  0x35   :  { %435 = vmatpush3.bf16.xpose.msra.mxu0 %v432_v22  ;;  %454 = vmatpush3.bf16.xpose.msra.mxu1 %v432_v22 }
  0x36   :  { %437 = vmatprep.subr.bf16.mxu0 %v436_v25  ;;  %447 = vmatprep.subr.bf16.mxu1 %v436_v25 }
  0x3d   :  { %439 = vmatpush3.bf16.xpose.msra.mxu0 %v436_v25  ;;  %455 = vmatpush3.bf16.xpose.msra.mxu1 %v436_v25 }
  0x44   :  { %385 = vmatmul.mubr.f32.vlgmr.msra.gmra.mrb[0].mxu0 %v12_v26  ;;  %397 = vmatmul.mubr.f32.vlgmr.msra.gmra.mrb[0].mxu1 %v20_v27 }
  0x45   :  { %387 = vmatprep.mubr.f32.mxu0 %v13_v28  ;;  %399 = vmatprep.mubr.f32.mxu1 %v21_v29 }
  0x48   :  { %388 = vmatmul.mubr.f32.gmra.mrb[2].mxu0 %v14_v30  ;;  %400 = vmatmul.mubr.f32.gmra.mrb[2].mxu1 %v22_v31 }
  0x49   :  { %390 = vmatprep.mubr.f32.mxu0 %v15_v32  ;;  %402 = vmatprep.mubr.f32.mxu1 %v23_v33 }
  0x4c   :  { %391 = vmatmul.mubr.f32.gmra.mrb[4].mxu0 %v16_v34  ;;  %403 = vmatmul.mubr.f32.gmra.mrb[4].mxu1 %v24_v35 }
  0x4d   :  { %393 = vmatprep.mubr.f32.mxu0 %v17_v36  ;;  %405 = vmatprep.mubr.f32.mxu1 %v25_v37 }
  0x50   :  { %394 = vmatmul.mubr.f32.gmra.mrb[6].mxu0 %v18_v38  ;;  %406 = vmatmul.mubr.f32.gmra.mrb[6].mxu1 %v26_v39 }
 0x117   :  { %v386_v40 = vpop.f32.mrb[0].mxu0  ;;  %v398_v41 = vpop.f32.mrb[0].mxu1 }
 0x118   :  { %v305_v42 = vmul.f32 -1.442695, %v386_v40  ;;  %v313_v43 = vmul.f32 -1.442695, %v398_v41  ;;  %v109_v44 = vpop.f32.mrb[1].mxu0  ;;  %v149_v45 = vpop.f32.mrb[1].mxu1 }
 0x119   :  { %v304_v46 = vmul.f32 -1.442695, %v109_v44  ;;  %v312_v47 = vmul.f32 -1.442695, %v149_v45 }
 0x11a   :  { %456 = vpow2.f32 %v305_v42 }
 0x11b   :  { %458 = vpow2.f32 %v313_v43  ;;  %v389_v48 = vpop.f32.mrb[2].mxu0  ;;  %v401_v49 = vpop.f32.mrb[2].mxu1 }
 0x11c   :  { %460 = vpow2.f32 %v304_v46  ;;  %v307_v50 = vmul.f32 -1.442695, %v389_v48  ;;  %v315_v51 = vmul.f32 -1.442695, %v401_v49  ;;  %v119_v52 = vpop.f32.mrb[3].mxu0  ;;  %v159_v53 = vpop.f32.mrb[3].mxu1 }
 0x11d   :  { %462 = vpow2.f32 %v312_v47  ;;  %v306_v54 = vmul.f32 -1.442695, %v119_v52  ;;  %v314_v55 = vmul.f32 -1.442695, %v159_v53 }
 0x11e   :  { %464 = vpow2.f32 %v307_v50 }
 0x11f   :  { %466 = vpow2.f32 %v315_v51  ;;  %v392_v56 = vpop.f32.mrb[4].mxu0  ;;  %v404_v57 = vpop.f32.mrb[4].mxu1 }
 0x120   :  { %468 = vpow2.f32 %v306_v54  ;;  %v309_v58 = vmul.f32 -1.442695, %v392_v56  ;;  %v317_v59 = vmul.f32 -1.442695, %v404_v57  ;;  %v129_v60 = vpop.f32.mrb[5].mxu0  ;;  %v169_v61 = vpop.f32.mrb[5].mxu1 }
 0x121   :  { %470 = vpow2.f32 %v314_v55  ;;  %v308_v62 = vmul.f32 -1.442695, %v129_v60  ;;  %v316_v63 = vmul.f32 -1.442695, %v169_v61 }
 0x122   :  { %472 = vpow2.f32 %v309_v58 }
 0x123   :  { %474 = vpow2.f32 %v317_v59  ;;  %v395_v0 = vpop.f32.mrb[6].mxu0  ;;  %v407_v1 = vpop.f32.mrb[6].mxu1 }
 0x124   :  { %v457_v2 = vpop.eup %456  ;;  %476 = vpow2.f32 %v308_v62  ;;  %v311_v3 = vmul.f32 -1.442695, %v395_v0  ;;  %v139_v4 = vpop.f32.mrb[7].mxu0  ;;  %v319_v30 = vmul.f32 -1.442695, %v407_v1 }
 0x125   :  { %v179_v5 = vpop.f32.mrb[7].mxu1  ;;  %v459_v6 = vpop.eup %458  ;;  %v237_v7 = vadd.f32 1.0, %v457_v2  ;;  %478 = vpow2.f32 %v316_v63  ;;  %v310_v33 = vmul.f32 -1.442695, %v139_v4 }
 0x126   :  { %v461_v8 = vpop.eup %460  ;;  %v245_v9 = vadd.f32 1.0, %v459_v6  ;;  %480 = vpow2.f32 %v311_v3  ;;  %v318_v35 = vmul.f32 -1.442695, %v179_v5 }
 0x127   :  { %v463_v10 = vpop.eup %462  ;;  %482 = vrcp.f32 %v237_v7  ;;  %v236_v11 = vadd.f32 1.0, %v461_v8 }
 0x128   :  { %v465_v12 = vpop.eup %464  ;;  %484 = vrcp.f32 %v245_v9  ;;  %v244_v13 = vadd.f32 1.0, %v463_v10 }
 0x129   :  { %v467_v14 = vpop.eup %466  ;;  %486 = vrcp.f32 %v236_v11  ;;  %v239_v15 = vadd.f32 1.0, %v465_v12 }
 0x12a   :  { %v469_v16 = vpop.eup %468  ;;  %488 = vrcp.f32 %v244_v13  ;;  %v247_v17 = vadd.f32 1.0, %v467_v14 }
 0x12b   :  { %v471_v18 = vpop.eup %470  ;;  %490 = vrcp.f32 %v239_v15  ;;  %v238_v19 = vadd.f32 1.0, %v469_v16 }
 0x12c   :  { %v473_v20 = vpop.eup %472  ;;  %492 = vrcp.f32 %v247_v17  ;;  %v246_v21 = vadd.f32 1.0, %v471_v18 }
 0x12d   :  { %v475_v22 = vpop.eup %474  ;;  %494 = vrcp.f32 %v238_v19  ;;  %v241_v23 = vadd.f32 1.0, %v473_v20 }
 0x12e   :  { %v477_v24 = vpop.eup %476  ;;  %496 = vrcp.f32 %v246_v21  ;;  %v249_v25 = vadd.f32 1.0, %v475_v22 }
 0x12f   :  { %v479_v26 = vpop.eup %478  ;;  %498 = vrcp.f32 %v241_v23  ;;  %v240_v27 = vadd.f32 1.0, %v477_v24 }
 0x130   :  { %v481_v28 = vpop.eup %480  ;;  %500 = vrcp.f32 %v249_v25  ;;  %v248_v29 = vadd.f32 1.0, %v479_v26 }
 0x131   :  { %v483_v31 = vpop.eup %482  ;;  %502 = vrcp.f32 %v240_v27  ;;  %v243_v32 = vadd.f32 1.0, %v481_v28 }
 0x132   :  { %v485_v34 = vpop.eup %484  ;;  %285 = vst [vmem:[%s681_s2 + $0x8] sm:$0xff] %v483_v31  ;;  %504 = vrcp.f32 %v248_v29 }
 0x133   :  { %v487_v36 = vpop.eup %486  ;;  %293 = vst [vmem:[%s681_s2 + $0x48] sm:$0xff] %v485_v34  ;;  %506 = vrcp.f32 %v243_v32 }
 0x134   :  { %v489_v37 = vpop.eup %488  ;;  %284 = vst [vmem:[%s681_s2] sm:$0xff] %v487_v36  ;;  %508 = vpow2.f32 %v319_v30 }
 0x135   :  { %v491_v38 = vpop.eup %490  ;;  %292 = vst [vmem:[%s681_s2 + $0x40] sm:$0xff] %v489_v37  ;;  %510 = vpow2.f32 %v310_v33 }
 0x136   :  { %v493_v39 = vpop.eup %492  ;;  %287 = vst [vmem:[%s681_s2 + $0x18] sm:$0xff] %v491_v38  ;;  %512 = vpow2.f32 %v318_v35 }
 0x137   :  { %v495_v40 = vpop.eup %494  ;;  %295 = vst [vmem:[%s681_s2 + $0x58] sm:$0xff] %v493_v39 }
 0x138   :  { %v497_v41 = vpop.eup %496  ;;  %286 = vst [vmem:[%s681_s2 + $0x10] sm:$0xff] %v495_v40 }
 0x139   :  { %v499_v42 = vpop.eup %498  ;;  %294 = vst [vmem:[%s681_s2 + $0x50] sm:$0xff] %v497_v41 }
 0x13a   :  { %v501_v43 = vpop.eup %500  ;;  %289 = vst [vmem:[%s681_s2 + $0x28] sm:$0xff] %v499_v42 }
 0x13b   :  { %v503_v44 = vpop.eup %502  ;;  %297 = vst [vmem:[%s681_s2 + $0x68] sm:$0xff] %v501_v43 }
 0x13c   :  { %v505_v45 = vpop.eup %504  ;;  %288 = vst [vmem:[%s681_s2 + $0x20] sm:$0xff] %v503_v44 }
 0x13d   :  { %v507_v46 = vpop.eup %506  ;;  %296 = vst [vmem:[%s681_s2 + $0x60] sm:$0xff] %v505_v45 }
 0x13e   :  { %v509_v47 = vpop.eup %508  ;;  %291 = vst [vmem:[%s681_s2 + $0x38] sm:$0xff] %v507_v46 }
 0x13f   :  { %v511_v48 = vpop.eup %510  ;;  %v251_v49 = vadd.f32 1.0, %v509_v47 }
 0x140   :  { %v513_v50 = vpop.eup %512  ;;  %v242_v51 = vadd.f32 1.0, %v511_v48 }
 0x141   :  { %514 = vrcp.f32 %v251_v49  ;;  %v250_v52 = vadd.f32 1.0, %v513_v50 }
 0x142   :  { %516 = vrcp.f32 %v242_v51 }
 0x143   :  { %518 = vrcp.f32 %v250_v52 }
 0x14b   :  { %v515_v53 = vpop.eup %514 }
 0x14c   :  { %v517_v54 = vpop.eup %516  ;;  %299 = vst [vmem:[%s681_s2 + $0x78] sm:$0xff] %v515_v53 }
 0x14d   :  { %v519_v55 = vpop.eup %518  ;;  %290 = vst [vmem:[%s681_s2 + $0x30] sm:$0xff] %v517_v54 }
 0x14e   :  { %298 = vst [vmem:[%s681_s2 + $0x70] sm:$0xff] %v519_v55 }

// kernel: gae_forward.2
= control target key start
LH: loop header
LB: loop body
LE: loop exit
PB: predicated region body
PF: predicated region fallthrough
CT: control target
= control target key end

     0   :  { %s1506_s2 = inlined_call_operand.vmem [shape: f32[128,128], index: 2, kind: input, shape index: {}]   ;;  %s1507_s0 = inlined_call_operand.vmem [shape: f32[128,128], index: 0, kind: input, shape index: {}]   ;;  %s1508_s1 = inlined_call_operand.vmem [shape: f32[128,128], index: 1, kind: input, shape index: {}]   ;;  %s1509_s3 = inlined_call_operand.vmem [shape: f32[128,128], index: 3, kind: input, shape index: {}]   ;;  %s1510_s4 = inlined_call_operand.vmem [shape: f32[128,128], index: 4, kind: output, shape index: {}]  }
   0x1   :  { %v49_v0 = vld [vmem:[%s1506_s2] sm:$0xff]  ;;  %v50_v1 = vld [vmem:[%s1506_s2 + $0x8] sm:$0xff]  ;;  %v51_v2 = vld [vmem:[%s1506_s2 + $0x10] sm:$0xff] }
   0x2   :  { %v1049_v3 = vpack.c.bf16 %v50_v1, %v49_v0  ;;  %v52_v4 = vld [vmem:[%s1506_s2 + $0x18] sm:$0xff]  ;;  %v53_v6 = vld [vmem:[%s1506_s2 + $0x20] sm:$0xff]  ;;  %v54_v7 = vld [vmem:[%s1506_s2 + $0x28] sm:$0xff] }
   0x3   :  { %v1053_v5 = vpack.c.bf16 %v52_v4, %v51_v2  ;;  %v1057_v8 = vpack.c.bf16 %v54_v7, %v53_v6  ;;  %v17_v9 = vld [vmem:[%s1507_s0] sm:$0xff]  ;;  %v55_v10 = vld [vmem:[%s1506_s2 + $0x30] sm:$0xff]  ;;  %v56_v11 = vld [vmem:[%s1506_s2 + $0x38] sm:$0xff] }
   0x4   :  { %1050 = vmatprep.subr.bf16.mxu0 %v1049_v3  ;;  %857 = vmatprep.mubr.f32.mxu0 %v17_v9  ;;  %v1061_v12 = vpack.c.bf16 %v56_v11, %v55_v10  ;;  %v57_v13 = vld [vmem:[%s1506_s2 + $0x40] sm:$0xff]  ;;  %v58_v14 = vld [vmem:[%s1506_s2 + $0x48] sm:$0xff]  ;;  %v59_v16 = vld [vmem:[%s1506_s2 + $0x50] sm:$0xff] }
   0x5   :  { %1052 = vmatpush3.bf16.msra.mxu0 %v1049_v3  ;;  %v1065_v15 = vpack.c.bf16 %v58_v14, %v57_v13  ;;  %v60_v17 = vld [vmem:[%s1506_s2 + $0x58] sm:$0xff]  ;;  %v61_v19 = vld [vmem:[%s1506_s2 + $0x60] sm:$0xff]  ;;  %v62_v20 = vld [vmem:[%s1506_s2 + $0x68] sm:$0xff] }
   0x6   :  { %1054 = vmatprep.subr.bf16.mxu0 %v1053_v5  ;;  %v1069_v18 = vpack.c.bf16 %v60_v17, %v59_v16  ;;  %v1073_v21 = vpack.c.bf16 %v62_v20, %v61_v19  ;;  %v63_v22 = vld [vmem:[%s1506_s2 + $0x70] sm:$0xff]  ;;  %v64_v23 = vld [vmem:[%s1506_s2 + $0x78] sm:$0xff]  ;;  %v18_v25 = vld [vmem:[%s1507_s0 + $0x8] sm:$0xff] }
   0x7   :  { %v1077_v24 = vpack.c.bf16 %v64_v23, %v63_v22  ;;  %v19_v26 = vld [vmem:[%s1507_s0 + $0x10] sm:$0xff]  ;;  %v20_v27 = vld [vmem:[%s1507_s0 + $0x18] sm:$0xff]  ;;  %v21_v28 = vld [vmem:[%s1507_s0 + $0x20] sm:$0xff] }
   0x8   :  { %v22_v29 = vld [vmem:[%s1507_s0 + $0x28] sm:$0xff]  ;;  %v23_v30 = vld [vmem:[%s1507_s0 + $0x30] sm:$0xff]  ;;  %v24_v31 = vld [vmem:[%s1507_s0 + $0x38] sm:$0xff] }
   0x9   :  { %1056 = vmatpush3.bf16.msra.mxu0 %v1053_v5  ;;  %v25_v32 = vld [vmem:[%s1507_s0 + $0x40] sm:$0xff]  ;;  %v26_v33 = vld [vmem:[%s1507_s0 + $0x48] sm:$0xff]  ;;  %v27_v34 = vld [vmem:[%s1507_s0 + $0x50] sm:$0xff] }
   0xa   :  { %1058 = vmatprep.subr.bf16.mxu0 %v1057_v8  ;;  %v28_v35 = vld [vmem:[%s1507_s0 + $0x58] sm:$0xff]  ;;  %v29_v36 = vld [vmem:[%s1507_s0 + $0x60] sm:$0xff]  ;;  %v30_v37 = vld [vmem:[%s1507_s0 + $0x68] sm:$0xff] }
   0xb   :  { %v31_v38 = vld [vmem:[%s1507_s0 + $0x70] sm:$0xff]  ;;  %v32_v39 = vld [vmem:[%s1507_s0 + $0x78] sm:$0xff]  ;;  %v1301_v40 = vld [vmem:[%s1508_s1] sm:$0xff] }
   0xc   :  { %913 = vmatprep.mubr.f32.mxu1 %v1301_v40  ;;  %v65_v41 = vld [vmem:[%s1509_s3] sm:$0xff]  ;;  %v66_v42 = vld [vmem:[%s1509_s3 + $0x8] sm:$0xff]  ;;  %v67_v43 = vld [vmem:[%s1509_s3 + $0x10] sm:$0xff] }
   0xd   :  { %1060 = vmatpush3.bf16.msra.mxu0 %v1057_v8  ;;  %v1113_v44 = vpack.c.bf16 %v66_v42, %v65_v41  ;;  %v68_v45 = vld [vmem:[%s1509_s3 + $0x18] sm:$0xff]  ;;  %v69_v47 = vld [vmem:[%s1509_s3 + $0x20] sm:$0xff]  ;;  %v70_v48 = vld [vmem:[%s1509_s3 + $0x28] sm:$0xff] }
   0xe   :  { %1062 = vmatprep.subr.bf16.mxu0 %v1061_v12  ;;  %v1117_v46 = vpack.c.bf16 %v68_v45, %v67_v43  ;;  %v1121_v49 = vpack.c.bf16 %v70_v48, %v69_v47  ;;  %v71_v50 = vld [vmem:[%s1509_s3 + $0x30] sm:$0xff]  ;;  %v72_v51 = vld [vmem:[%s1509_s3 + $0x38] sm:$0xff]  ;;  %v73_v53 = vld [vmem:[%s1509_s3 + $0x40] sm:$0xff] }
   0xf   :  { %v1125_v52 = vpack.c.bf16 %v72_v51, %v71_v50  ;;  %v74_v54 = vld [vmem:[%s1509_s3 + $0x48] sm:$0xff]  ;;  %v75_v56 = vld [vmem:[%s1509_s3 + $0x50] sm:$0xff]  ;;  %v76_v57 = vld [vmem:[%s1509_s3 + $0x58] sm:$0xff] }
  0x10   :  { %v1129_v55 = vpack.c.bf16 %v74_v54, %v73_v53  ;;  %v1133_v58 = vpack.c.bf16 %v76_v57, %v75_v56  ;;  %v77_v59 = vld [vmem:[%s1509_s3 + $0x60] sm:$0xff]  ;;  %v78_v60 = vld [vmem:[%s1509_s3 + $0x68] sm:$0xff]  ;;  %v1354_v23 = vld [vmem:[%s1508_s1 + $0x10] sm:$0xff] }
  0x11   :  { %1064 = vmatpush3.bf16.msra.mxu0 %v1061_v12  ;;  %v1137_v61 = vpack.c.bf16 %v78_v60, %v77_v59  ;;  %v1349_v22 = vld [vmem:[%s1508_s1 + $0x8] sm:$0xff] }
  0x12   :  { %1066 = vmatprep.subr.bf16.mxu0 %v1065_v15 }
  0x15   :  { %1068 = vmatpush3.bf16.msra.mxu0 %v1065_v15 }
  0x16   :  { %1070 = vmatprep.subr.bf16.mxu0 %v1069_v18 }
  0x19   :  { %1072 = vmatpush3.bf16.msra.mxu0 %v1069_v18 }
  0x1a   :  { %1074 = vmatprep.subr.bf16.mxu0 %v1073_v21 }
  0x1d   :  { %1076 = vmatpush3.bf16.msra.mxu0 %v1073_v21 }
  0x1e   :  { %1078 = vmatprep.subr.bf16.mxu0 %v1077_v24 }
  0x21   :  { %1080 = vmatpush3.bf16.msra.mxu0 %v1077_v24  ;;  %v1361_v24 = vld [vmem:[%s1508_s1 + $0x18] sm:$0xff] }
  0x22   :  { %1114 = vmatprep.subr.bf16.mxu0 %v1113_v44 }
  0x24   :  { %858 = vmatmul.mubr.f32.vlgmr.msra.gmra.mrb[0].mxu0 %v18_v25  ;;  %v1366_v25 = vld [vmem:[%s1508_s1 + $0x20] sm:$0xff] }
  0x25   :  { %860 = vmatprep.mubr.f32.mxu0 %v19_v26  ;;  %1116 = vmatpush3.bf16.msra.mxu0 %v1113_v44  ;;  %v1373_v26 = vld [vmem:[%s1508_s1 + $0x28] sm:$0xff] }
  0x26   :  { %1118 = vmatprep.subr.bf16.mxu0 %v1117_v46 }
  0x28   :  { %861 = vmatmul.mubr.f32.gmra.mrb[2].mxu0 %v20_v27  ;;  %v1378_v27 = vld [vmem:[%s1508_s1 + $0x30] sm:$0xff] }
  0x29   :  { %863 = vmatprep.mubr.f32.mxu0 %v21_v28  ;;  %1120 = vmatpush3.bf16.msra.mxu0 %v1117_v46  ;;  %v1385_v28 = vld [vmem:[%s1508_s1 + $0x38] sm:$0xff] }
  0x2a   :  { %1122 = vmatprep.subr.bf16.mxu0 %v1121_v49 }
  0x2c   :  { %864 = vmatmul.mubr.f32.gmra.mrb[4].mxu0 %v22_v29  ;;  %v1390_v29 = vld [vmem:[%s1508_s1 + $0x40] sm:$0xff] }
  0x2d   :  { %866 = vmatprep.mubr.f32.mxu0 %v23_v30  ;;  %1124 = vmatpush3.bf16.msra.mxu0 %v1121_v49  ;;  %v1397_v30 = vld [vmem:[%s1508_s1 + $0x48] sm:$0xff] }
  0x2e   :  { %1126 = vmatprep.subr.bf16.mxu0 %v1125_v52 }
  0x30   :  { %867 = vmatmul.mubr.f32.gmra.mrb[6].mxu0 %v24_v31  ;;  %v1402_v31 = vld [vmem:[%s1508_s1 + $0x50] sm:$0xff] }
  0x31   :  { %869 = vmatprep.mubr.f32.mxu0 %v25_v32  ;;  %1128 = vmatpush3.bf16.msra.mxu0 %v1125_v52  ;;  %v1409_v32 = vld [vmem:[%s1508_s1 + $0x58] sm:$0xff] }
  0x32   :  { %1130 = vmatprep.subr.bf16.mxu0 %v1129_v55 }
  0x34   :  { %870 = vmatmul.mubr.f32.gmra.mrb[8].mxu0 %v26_v33  ;;  %v1414_v33 = vld [vmem:[%s1508_s1 + $0x60] sm:$0xff] }
  0x35   :  { %872 = vmatprep.mubr.f32.mxu0 %v27_v34  ;;  %1132 = vmatpush3.bf16.msra.mxu0 %v1129_v55  ;;  %v1421_v34 = vld [vmem:[%s1508_s1 + $0x68] sm:$0xff] }
  0x36   :  { %1134 = vmatprep.subr.bf16.mxu0 %v1133_v58 }
  0x38   :  { %873 = vmatmul.mubr.f32.gmra.mrb[10].mxu0 %v28_v35  ;;  %v1426_v35 = vld [vmem:[%s1508_s1 + $0x70] sm:$0xff] }
  0x39   :  { %875 = vmatprep.mubr.f32.mxu0 %v29_v36  ;;  %1136 = vmatpush3.bf16.msra.mxu0 %v1133_v58  ;;  %v1433_v36 = vld [vmem:[%s1508_s1 + $0x78] sm:$0xff] }
  0x3a   :  { %1138 = vmatprep.subr.bf16.mxu0 %v1137_v61 }
  0x3c   :  { %876 = vmatmul.mubr.f32.gmra.mrb[12].mxu0 %v30_v37  ;;  %v79_v37 = vld [vmem:[%s1509_s3 + $0x70] sm:$0xff] }
  0x3d   :  { %878 = vmatprep.mubr.f32.mxu0 %v31_v38  ;;  %1140 = vmatpush3.bf16.msra.mxu0 %v1137_v61  ;;  %v80_v38 = vld [vmem:[%s1509_s3 + $0x78] sm:$0xff] }
  0x40   :  { %879 = vmatmul.mubr.f32.gmra.mrb[14].mxu0 %v32_v39  ;;  %v1141_v39 = vpack.c.bf16 %v80_v38, %v79_v37 }
  0x42   :  { %1142 = vmatprep.subr.bf16.mxu0 %v1141_v39 }
  0x43   :  { %1144 = vmatpush3.bf16.msra.mxu0 %v1141_v39 }
  0xf7   :  { %v859_v62 = vpop.f32.mrb[0].mxu0 }
  0xf8   :  { %v147_v63 = vpop.f32.mrb[1].mxu0 }
  0xf9   :  { %v1081_v0 = vpack.c.bf16 %v859_v62, %v147_v63 }
  0xfb   :  { %v862_v1 = vpop.f32.mrb[2].mxu0  ;;  %1082 = vmatprep.subr.bf16.mxu1 %v1081_v0 }
  0xfc   :  { %v157_v2 = vpop.f32.mrb[3].mxu0  ;;  %1084 = vmatpush3.bf16.msra.mxu1 %v1081_v0 }
  0xfd   :  { %v1085_v3 = vpack.c.bf16 %v862_v1, %v157_v2 }
  0xff   :  { %v865_v4 = vpop.f32.mrb[4].mxu0  ;;  %1086 = vmatprep.subr.bf16.mxu1 %v1085_v3 }
 0x100   :  { %v167_v5 = vpop.f32.mrb[5].mxu0  ;;  %1088 = vmatpush3.bf16.msra.mxu1 %v1085_v3 }
 0x101   :  { %v1089_v6 = vpack.c.bf16 %v865_v4, %v167_v5 }
 0x103   :  { %v868_v7 = vpop.f32.mrb[6].mxu0  ;;  %1090 = vmatprep.subr.bf16.mxu1 %v1089_v6 }
 0x104   :  { %v177_v8 = vpop.f32.mrb[7].mxu0  ;;  %1092 = vmatpush3.bf16.msra.mxu1 %v1089_v6 }
 0x105   :  { %v1093_v9 = vpack.c.bf16 %v868_v7, %v177_v8 }
 0x107   :  { %v871_v10 = vpop.f32.mrb[8].mxu0  ;;  %1094 = vmatprep.subr.bf16.mxu1 %v1093_v9 }
 0x108   :  { %v187_v11 = vpop.f32.mrb[9].mxu0  ;;  %1096 = vmatpush3.bf16.msra.mxu1 %v1093_v9 }
 0x109   :  { %v1097_v12 = vpack.c.bf16 %v871_v10, %v187_v11 }
 0x10b   :  { %v874_v13 = vpop.f32.mrb[10].mxu0  ;;  %1098 = vmatprep.subr.bf16.mxu1 %v1097_v12 }
 0x10c   :  { %v197_v14 = vpop.f32.mrb[11].mxu0  ;;  %1100 = vmatpush3.bf16.msra.mxu1 %v1097_v12 }
 0x10d   :  { %v1101_v15 = vpack.c.bf16 %v874_v13, %v197_v14 }
 0x10f   :  { %v877_v16 = vpop.f32.mrb[12].mxu0  ;;  %1102 = vmatprep.subr.bf16.mxu1 %v1101_v15 }
 0x110   :  { %v207_v17 = vpop.f32.mrb[13].mxu0  ;;  %1104 = vmatpush3.bf16.msra.mxu1 %v1101_v15 }
 0x111   :  { %v1105_v18 = vpack.c.bf16 %v877_v16, %v207_v17 }
 0x113   :  { %v880_v19 = vpop.f32.mrb[14].mxu0  ;;  %1106 = vmatprep.subr.bf16.mxu1 %v1105_v18 }
 0x114   :  { %v217_v20 = vpop.f32.mrb[15].mxu0  ;;  %1108 = vmatpush3.bf16.msra.mxu1 %v1105_v18 }
 0x115   :  { %v1109_v21 = vpack.c.bf16 %v880_v19, %v217_v20 }
 0x117   :  { %1110 = vmatprep.subr.bf16.mxu1 %v1109_v21 }
 0x118   :  { %1112 = vmatpush3.bf16.msra.mxu1 %v1109_v21 }
 0x11b   :  { %914 = vmatmul.mubr.f32.vlgmr.msra.gmra.mrb[0].mxu1 %v1349_v22 }
 0x11c   :  { %916 = vmatprep.mubr.f32.mxu1 %v1354_v23 }
 0x11f   :  { %917 = vmatmul.mubr.f32.gmra.mrb[2].mxu1 %v1361_v24 }
 0x120   :  { %919 = vmatprep.mubr.f32.mxu1 %v1366_v25 }
 0x123   :  { %920 = vmatmul.mubr.f32.gmra.mrb[4].mxu1 %v1373_v26 }
 0x124   :  { %922 = vmatprep.mubr.f32.mxu1 %v1378_v27 }
 0x127   :  { %923 = vmatmul.mubr.f32.gmra.mrb[6].mxu1 %v1385_v28 }
 0x128   :  { %925 = vmatprep.mubr.f32.mxu1 %v1390_v29 }
 0x12b   :  { %926 = vmatmul.mubr.f32.gmra.mrb[8].mxu1 %v1397_v30 }
 0x12c   :  { %928 = vmatprep.mubr.f32.mxu1 %v1402_v31 }
 0x12f   :  { %929 = vmatmul.mubr.f32.gmra.mrb[10].mxu1 %v1409_v32 }
 0x130   :  { %931 = vmatprep.mubr.f32.mxu1 %v1414_v33 }
 0x133   :  { %932 = vmatmul.mubr.f32.gmra.mrb[12].mxu1 %v1421_v34 }
 0x134   :  { %934 = vmatprep.mubr.f32.mxu1 %v1426_v35 }
 0x137   :  { %935 = vmatmul.mubr.f32.gmra.mrb[14].mxu1 %v1433_v36 }
 0x138   :  { %1025 = vmatprep.mubr.f32.mxu1 %v1301_v40 }
 0x1ee   :  { %v915_v41 = vpop.f32.mrb[0].mxu1 }
 0x1ef   :  { %v292_v42 = vpop.f32.mrb[1].mxu1  ;;  %v372_v44 = vmax.f32 %v915_v41, 0.0 }
 0x1f0   :  { %v371_v43 = vmax.f32 %v292_v42, 0.0 }
 0x1f2   :  { %v918_v45 = vpop.f32.mrb[2].mxu1  ;;  %969 = vmatprep.mubr.f32.mxu0 %v371_v43 }
 0x1f3   :  { %v302_v46 = vpop.f32.mrb[3].mxu1  ;;  %970 = vmatmul.mubr.f32.vlgmr.msra.gmra.mrb[16].mxu0 %v372_v44  ;;  %v374_v47 = vmax.f32 %v918_v45, 0.0 }
 0x1f4   :  { %v373_v40 = vmax.f32 %v302_v46, 0.0 }
 0x1f6   :  { %v921_v48 = vpop.f32.mrb[4].mxu1  ;;  %972 = vmatprep.mubr.f32.mxu0 %v373_v40 }
 0x1f7   :  { %v312_v49 = vpop.f32.mrb[5].mxu1  ;;  %973 = vmatmul.mubr.f32.gmra.mrb[18].mxu0 %v374_v47  ;;  %v376_v51 = vmax.f32 %v921_v48, 0.0 }
 0x1f8   :  { %v375_v50 = vmax.f32 %v312_v49, 0.0 }
 0x1fa   :  { %v924_v52 = vpop.f32.mrb[6].mxu1  ;;  %975 = vmatprep.mubr.f32.mxu0 %v375_v50 }
 0x1fb   :  { %v322_v53 = vpop.f32.mrb[7].mxu1  ;;  %976 = vmatmul.mubr.f32.gmra.mrb[20].mxu0 %v376_v51  ;;  %v378_v55 = vmax.f32 %v924_v52, 0.0 }
 0x1fc   :  { %v377_v54 = vmax.f32 %v322_v53, 0.0 }
 0x1fe   :  { %v927_v56 = vpop.f32.mrb[8].mxu1  ;;  %978 = vmatprep.mubr.f32.mxu0 %v377_v54 }
 0x1ff   :  { %v332_v57 = vpop.f32.mrb[9].mxu1  ;;  %979 = vmatmul.mubr.f32.gmra.mrb[22].mxu0 %v378_v55  ;;  %v380_v59 = vmax.f32 %v927_v56, 0.0 }
 0x200   :  { %v379_v58 = vmax.f32 %v332_v57, 0.0 }
 0x202   :  { %v930_v60 = vpop.f32.mrb[10].mxu1  ;;  %981 = vmatprep.mubr.f32.mxu0 %v379_v58 }
 0x203   :  { %v342_v61 = vpop.f32.mrb[11].mxu1  ;;  %982 = vmatmul.mubr.f32.gmra.mrb[24].mxu0 %v380_v59  ;;  %v382_v63 = vmax.f32 %v930_v60, 0.0 }
 0x204   :  { %v381_v62 = vmax.f32 %v342_v61, 0.0 }
 0x206   :  { %v933_v0 = vpop.f32.mrb[12].mxu1  ;;  %984 = vmatprep.mubr.f32.mxu0 %v381_v62 }
 0x207   :  { %v352_v1 = vpop.f32.mrb[13].mxu1  ;;  %985 = vmatmul.mubr.f32.gmra.mrb[26].mxu0 %v382_v63  ;;  %v384_v3 = vmax.f32 %v933_v0, 0.0 }
 0x208   :  { %v383_v2 = vmax.f32 %v352_v1, 0.0 }
 0x20a   :  { %v936_v4 = vpop.f32.mrb[14].mxu1  ;;  %987 = vmatprep.mubr.f32.mxu0 %v383_v2 }
 0x20b   :  { %v362_v5 = vpop.f32.mrb[15].mxu1  ;;  %988 = vmatmul.mubr.f32.gmra.mrb[28].mxu0 %v384_v3  ;;  %v386_v7 = vmax.f32 %v936_v4, 0.0 }
 0x20c   :  { %v385_v6 = vmax.f32 %v362_v5, 0.0 }
 0x20e   :  { %990 = vmatprep.mubr.f32.mxu0 %v385_v6 }
 0x20f   :  { %991 = vmatmul.mubr.f32.gmra.mrb[30].mxu0 %v386_v7 }
 0x2c6   :  { %v971_v8 = vpop.f32.mrb[16].mxu0 }
 0x2c7   :  { %v453_v9 = vpop.f32.mrb[17].mxu0 }
 0x2c8   :  { %v1145_v10 = vpack.c.bf16 %v971_v8, %v453_v9 }
 0x2ca   :  { %v974_v11 = vpop.f32.mrb[18].mxu0  ;;  %1146 = vmatprep.subr.bf16.mxu1 %v1145_v10 }
 0x2cb   :  { %v463_v12 = vpop.f32.mrb[19].mxu0  ;;  %1148 = vmatpush3.bf16.msra.mxu1 %v1145_v10 }
 0x2cc   :  { %v1149_v13 = vpack.c.bf16 %v974_v11, %v463_v12 }
 0x2ce   :  { %v977_v14 = vpop.f32.mrb[20].mxu0  ;;  %1150 = vmatprep.subr.bf16.mxu1 %v1149_v13 }
 0x2cf   :  { %v473_v15 = vpop.f32.mrb[21].mxu0  ;;  %1152 = vmatpush3.bf16.msra.mxu1 %v1149_v13 }
 0x2d0   :  { %v1153_v16 = vpack.c.bf16 %v977_v14, %v473_v15 }
 0x2d2   :  { %v980_v17 = vpop.f32.mrb[22].mxu0  ;;  %1154 = vmatprep.subr.bf16.mxu1 %v1153_v16 }
 0x2d3   :  { %v483_v18 = vpop.f32.mrb[23].mxu0  ;;  %1156 = vmatpush3.bf16.msra.mxu1 %v1153_v16 }
 0x2d4   :  { %v1157_v19 = vpack.c.bf16 %v980_v17, %v483_v18 }
 0x2d6   :  { %v983_v20 = vpop.f32.mrb[24].mxu0  ;;  %1158 = vmatprep.subr.bf16.mxu1 %v1157_v19 }
 0x2d7   :  { %v493_v21 = vpop.f32.mrb[25].mxu0  ;;  %1160 = vmatpush3.bf16.msra.mxu1 %v1157_v19 }
 0x2d8   :  { %v1161_v37 = vpack.c.bf16 %v983_v20, %v493_v21 }
 0x2da   :  { %v986_v38 = vpop.f32.mrb[26].mxu0  ;;  %1162 = vmatprep.subr.bf16.mxu1 %v1161_v37 }
 0x2db   :  { %v503_v39 = vpop.f32.mrb[27].mxu0  ;;  %1164 = vmatpush3.bf16.msra.mxu1 %v1161_v37 }
 0x2dc   :  { %v1165_v41 = vpack.c.bf16 %v986_v38, %v503_v39 }
 0x2de   :  { %v989_v42 = vpop.f32.mrb[28].mxu0  ;;  %1166 = vmatprep.subr.bf16.mxu1 %v1165_v41 }
 0x2df   :  { %v513_v43 = vpop.f32.mrb[29].mxu0  ;;  %1168 = vmatpush3.bf16.msra.mxu1 %v1165_v41 }
 0x2e0   :  { %v1169_v44 = vpack.c.bf16 %v989_v42, %v513_v43 }
 0x2e2   :  { %v992_v45 = vpop.f32.mrb[30].mxu0  ;;  %1170 = vmatprep.subr.bf16.mxu1 %v1169_v44 }
 0x2e3   :  { %v523_v46 = vpop.f32.mrb[31].mxu0  ;;  %1172 = vmatpush3.bf16.msra.mxu1 %v1169_v44 }
 0x2e4   :  { %v1173_v40 = vpack.c.bf16 %v992_v45, %v523_v46 }
 0x2e6   :  { %1174 = vmatprep.subr.bf16.mxu1 %v1173_v40 }
 0x2e7   :  { %1176 = vmatpush3.bf16.msra.mxu1 %v1173_v40 }
 0x2ea   :  { %1026 = vmatmul.mubr.f32.vlgmr.msra.gmra.mrb[16].mxu1 %v1349_v22 }
 0x2eb   :  { %1028 = vmatprep.mubr.f32.mxu1 %v1354_v23 }
 0x2ee   :  { %1029 = vmatmul.mubr.f32.gmra.mrb[18].mxu1 %v1361_v24 }
 0x2ef   :  { %1031 = vmatprep.mubr.f32.mxu1 %v1366_v25 }
 0x2f2   :  { %1032 = vmatmul.mubr.f32.gmra.mrb[20].mxu1 %v1373_v26 }
 0x2f3   :  { %1034 = vmatprep.mubr.f32.mxu1 %v1378_v27 }
 0x2f6   :  { %1035 = vmatmul.mubr.f32.gmra.mrb[22].mxu1 %v1385_v28 }
 0x2f7   :  { %1037 = vmatprep.mubr.f32.mxu1 %v1390_v29 }
 0x2fa   :  { %1038 = vmatmul.mubr.f32.gmra.mrb[24].mxu1 %v1397_v30 }
 0x2fb   :  { %1040 = vmatprep.mubr.f32.mxu1 %v1402_v31 }
 0x2fe   :  { %1041 = vmatmul.mubr.f32.gmra.mrb[26].mxu1 %v1409_v32 }
 0x2ff   :  { %1043 = vmatprep.mubr.f32.mxu1 %v1414_v33 }
 0x302   :  { %1044 = vmatmul.mubr.f32.gmra.mrb[28].mxu1 %v1421_v34 }
 0x303   :  { %1046 = vmatprep.mubr.f32.mxu1 %v1426_v35 }
 0x306   :  { %1047 = vmatmul.mubr.f32.gmra.mrb[30].mxu1 %v1433_v36 }
 0x3bd   :  { %v1027_v22 = vpop.f32.mrb[16].mxu1 }
 0x3be   :  { %678 = vst [vmem:[%s1510_s4 + $0x8] sm:$0xff] %v1027_v22  ;;  %v598_v23 = vpop.f32.mrb[17].mxu1 }
 0x3bf   :  { %677 = vst [vmem:[%s1510_s4] sm:$0xff] %v598_v23 }
 0x3c1   :  { %v1030_v24 = vpop.f32.mrb[18].mxu1 }
 0x3c2   :  { %680 = vst [vmem:[%s1510_s4 + $0x18] sm:$0xff] %v1030_v24  ;;  %v608_v25 = vpop.f32.mrb[19].mxu1 }
 0x3c3   :  { %679 = vst [vmem:[%s1510_s4 + $0x10] sm:$0xff] %v608_v25 }
 0x3c5   :  { %v1033_v26 = vpop.f32.mrb[20].mxu1 }
 0x3c6   :  { %682 = vst [vmem:[%s1510_s4 + $0x28] sm:$0xff] %v1033_v26  ;;  %v618_v27 = vpop.f32.mrb[21].mxu1 }
 0x3c7   :  { %681 = vst [vmem:[%s1510_s4 + $0x20] sm:$0xff] %v618_v27 }
 0x3c9   :  { %v1036_v28 = vpop.f32.mrb[22].mxu1 }
 0x3ca   :  { %684 = vst [vmem:[%s1510_s4 + $0x38] sm:$0xff] %v1036_v28  ;;  %v628_v29 = vpop.f32.mrb[23].mxu1 }
 0x3cb   :  { %683 = vst [vmem:[%s1510_s4 + $0x30] sm:$0xff] %v628_v29 }
 0x3cd   :  { %v1039_v30 = vpop.f32.mrb[24].mxu1 }
 0x3ce   :  { %686 = vst [vmem:[%s1510_s4 + $0x48] sm:$0xff] %v1039_v30  ;;  %v638_v31 = vpop.f32.mrb[25].mxu1 }
 0x3cf   :  { %685 = vst [vmem:[%s1510_s4 + $0x40] sm:$0xff] %v638_v31 }
 0x3d1   :  { %v1042_v32 = vpop.f32.mrb[26].mxu1 }
 0x3d2   :  { %688 = vst [vmem:[%s1510_s4 + $0x58] sm:$0xff] %v1042_v32  ;;  %v648_v33 = vpop.f32.mrb[27].mxu1 }
 0x3d3   :  { %687 = vst [vmem:[%s1510_s4 + $0x50] sm:$0xff] %v648_v33 }
 0x3d5   :  { %v1045_v34 = vpop.f32.mrb[28].mxu1 }
 0x3d6   :  { %690 = vst [vmem:[%s1510_s4 + $0x68] sm:$0xff] %v1045_v34  ;;  %v658_v35 = vpop.f32.mrb[29].mxu1 }
 0x3d7   :  { %689 = vst [vmem:[%s1510_s4 + $0x60] sm:$0xff] %v658_v35 }
 0x3d9   :  { %v1048_v36 = vpop.f32.mrb[30].mxu1 }
 0x3da   :  { %692 = vst [vmem:[%s1510_s4 + $0x78] sm:$0xff] %v1048_v36  ;;  %v668_v47 = vpop.f32.mrb[31].mxu1 }
 0x3db   :  { %691 = vst [vmem:[%s1510_s4 + $0x70] sm:$0xff] %v668_v47 }

</bundles_post_ra>
